<compile_context>
chip_gen: v5e
topology: v5e:2x2
jax: 0.10.0
libtpu: 0.0.40
codegen_flags: <defaults>
</compile_context>

<pallas_src>
import jax
import jax.numpy as jnp
from jax.experimental import pallas as pl
from jax.experimental.pallas import tpu as pltpu

REPARAM_NOISE = 1e-6


def _policy_kernel(state_ref, w1_ref, b1_ref, w2_ref, b2_ref,
                   wh_ref, bh_ref, lo_ref, hi_ref, out_ref):
    # In-kernel cast to the MXU compute dtype (no wrapper-side HBM round trip).
    x = state_ref[...].astype(w1_ref.dtype)

    # fc1 + ReLU  (MXU matmul, f32 accumulate; biases stay f32)
    h1 = jnp.dot(x, w1_ref[...], preferred_element_type=jnp.float32) + b1_ref[...]
    h1 = jnp.maximum(h1, 0.0).astype(w2_ref.dtype)

    # fc2 + ReLU
    h2 = jnp.dot(h1, w2_ref[...], preferred_element_type=jnp.float32) + b2_ref[...]
    h2 = jnp.maximum(h2, 0.0).astype(wh_ref.dtype)

    # fused [mu | sigma | pad] head: one matmul, one lane-dense (>=128) output slab
    head = jnp.dot(h2, wh_ref[...], preferred_element_type=jnp.float32) + bh_ref[...]

    # Per-lane clamp: mu lanes get (-inf, +inf) -> identity; sigma (and padded)
    # lanes get [1e-6, 1.0].  Two VPU min/max ops, no iota/select.
    out = jnp.minimum(jnp.maximum(head, lo_ref[...]), hi_ref[...])
    out_ref[...] = out.astype(out_ref.dtype)


def _round_up(x, m):
    return (x + m - 1) // m * m


def prepare_params(params, n_actions, compute_dtype=jnp.bfloat16):
    """Kernel-ready params.

    * weights cast to `compute_dtype` (bf16 = MXU-native production path;
      f32 only for exact-parity tests)
    * mu/sigma heads fused and zero-padded to a lane-dense (multiple-of-128) width
    * per-lane clamp bounds lo/hi precomputed (mu lanes unbounded, sigma lanes
      clamped to [1e-6, 1]; padded lanes clamp to 1e-6 and are sliced away)
    """
    fc2 = params["wmu"].shape[0]
    two_na = 2 * n_actions
    head_pad = max(128, _round_up(two_na, 128))

    w_head = jnp.zeros((fc2, head_pad), jnp.float32)
    w_head = w_head.at[:, :n_actions].set(params["wmu"])
    w_head = w_head.at[:, n_actions:two_na].set(params["wsg"])

    b_head = jnp.zeros((1, head_pad), jnp.float32)
    b_head = b_head.at[:, :n_actions].set(params["bmu"])
    b_head = b_head.at[:, n_actions:two_na].set(params["bsg"])

    lane = jnp.arange(head_pad)[None, :]
    lo = jnp.where(lane < n_actions, -jnp.inf, REPARAM_NOISE).astype(jnp.float32)
    hi = jnp.where(lane < n_actions, jnp.inf, 1.0).astype(jnp.float32)

    return {
        "w1": params["w1"].astype(compute_dtype),
        "b1": params["b1"].astype(jnp.float32),
        "w2": params["w2"].astype(compute_dtype),
        "b2": params["b2"].astype(jnp.float32),
        "w_head": w_head.astype(compute_dtype),
        "b_head": b_head,
        "lo": lo,
        "hi": hi,
        "n_actions": n_actions,
    }


def _pick_batch_tile(B, block_b):
    """Small B -> one block (latency-bound anyway).  Large B -> at least two
    grid steps so the 'parallel' batch axis shards across v7x's 2 TensorCores,
    with tiles kept >=128 rows to amortize the ~0.35us per-grid-step overhead."""
    if B <= 256:
        return B
    half = (B // 2) // 8 * 8
    return min(block_b, max(128, half))


def policy_explore_forward(state, kp, *, block_b=512):
    """Whole MLP (fc1->relu->fc2->relu->[mu|sigma]) in one pallas_call.

    state : (B, input_dim) float32 (cast to the compute dtype inside the kernel)
    kp    : kernel-ready params from prepare_params()
    returns (mu, sigma), each (B, n_actions) float32
    """
    n_actions = kp["n_actions"]
    B, in_dim = state.shape
    fc1 = kp["w1"].shape[1]
    fc2 = kp["w2"].shape[1]
    head_pad = kp["w_head"].shape[1]

    TB = _pick_batch_tile(B, block_b)
    grid = (pl.cdiv(B, TB),)

    out = pl.pallas_call(
        _policy_kernel,
        out_shape=jax.ShapeDtypeStruct((B, head_pad), jnp.float32),
        grid=grid,
        in_specs=[
            pl.BlockSpec((TB, in_dim), lambda i: (i, 0)),     # state: tiled over batch
            pl.BlockSpec((in_dim, fc1), lambda i: (0, 0)),    # weights/biases pinned in VMEM
            pl.BlockSpec((1, fc1), lambda i: (0, 0)),
            pl.BlockSpec((fc1, fc2), lambda i: (0, 0)),
            pl.BlockSpec((1, fc2), lambda i: (0, 0)),
            pl.BlockSpec((fc2, head_pad), lambda i: (0, 0)),
            pl.BlockSpec((1, head_pad), lambda i: (0, 0)),
            pl.BlockSpec((1, head_pad), lambda i: (0, 0)),    # lo (per-lane clamp floor)
            pl.BlockSpec((1, head_pad), lambda i: (0, 0)),    # hi (per-lane clamp ceil)
        ],
        out_specs=pl.BlockSpec((TB, head_pad), lambda i: (i, 0)),  # lane-dense writeback
        compiler_params=pltpu.CompilerParams(
            dimension_semantics=("parallel",)),  # batch tiles shard across v7x's 2 TCs
    )(state, kp["w1"], kp["b1"], kp["w2"], kp["b2"],
      kp["w_head"], kp["b_head"], kp["lo"], kp["hi"])

    mu = out[:, :n_actions]
    sigma = out[:, n_actions:2 * n_actions]
    return mu, sigma


def init_params(key, input_dim, fc1_dims, fc2_dims, n_actions):
    """Deterministic init mimicking nn.Linear's U(-1/sqrt(fan_in), 1/sqrt(fan_in)).
    Weights stored pre-transposed as (in, out); biases as (1, out)."""
    def linear(k, fan_in, fan_out):
        kw, kb = jax.random.split(k)
        bound = 1.0 / jnp.sqrt(fan_in)
        w = jax.random.uniform(kw, (fan_in, fan_out), jnp.float32, -bound, bound)
        b = jax.random.uniform(kb, (1, fan_out), jnp.float32, -bound, bound)
        return w, b

    k1, k2, k3, k4 = jax.random.split(key, 4)
    w1, b1 = linear(k1, input_dim, fc1_dims)
    w2, b2 = linear(k2, fc1_dims, fc2_dims)
    wmu, bmu = linear(k3, fc2_dims, n_actions)
    wsg, bsg = linear(k4, fc2_dims, n_actions)
    return {"w1": w1, "b1": b1, "w2": w2, "b2": b2,
            "wmu": wmu, "bmu": bmu, "wsg": wsg, "bsg": bsg}


def reference_forward(state, p):
    h1 = jnp.maximum(state @ p["w1"] + p["b1"], 0.0)
    h2 = jnp.maximum(h1 @ p["w2"] + p["b2"], 0.0)
    mu = h2 @ p["wmu"] + p["bmu"]
    sigma = jnp.clip(h2 @ p["wsg"] + p["bsg"], REPARAM_NOISE, 1.0)
    return mu, sigma


if __name__ == "__main__":
    # Small shapes consistent with the module:
    #   batch=8, input_dims=(32,), fc1=fc2=256, n_actions=8
    B, INPUT_DIM, FC1, FC2, N_ACT = 8, 32, 256, 256, 8

    key = jax.random.PRNGKey(0)
    k_params, k_state, k_big = jax.random.split(key, 3)
    params = init_params(k_params, INPUT_DIM, FC1, FC2, N_ACT)
    state = jax.random.normal(k_state, (B, INPUT_DIM), jnp.float32)

    mu_ref, sigma_ref = reference_forward(state, params)
    # Range check against the float32 clip bound (float32(1e-6) < double 1e-6).
    sigma_floor = float(jnp.float32(REPARAM_NOISE))

    # --- f32 path: exact parity with the fp32 PyTorch module (test-only; on v7x
    # the MXU has no f32 mode so this path is emulated and slow) ---
    kp32 = prepare_params(params, N_ACT, compute_dtype=jnp.float32)
    mu32, sg32 = policy_explore_forward(state, kp32)
    jax.block_until_ready((mu32, sg32))
    assert mu32.shape == (B, N_ACT) and sg32.shape == (B, N_ACT)
    assert jnp.allclose(mu32, mu_ref, atol=1e-4, rtol=1e-4)
    assert jnp.allclose(sg32, sigma_ref, atol=1e-4, rtol=1e-4)
    assert float(sg32.min()) >= sigma_floor and float(sg32.max()) <= 1.0

    # --- bf16 path: production default (MXU-native weights, f32 accumulate).
    # Note: intermediates h1/h2 and state are bf16-quantized -> not bit-exact
    # with the fp32 module; covered by the looser tolerance below. ---
    kp16 = prepare_params(params, N_ACT, compute_dtype=jnp.bfloat16)
    mu16, sg16 = policy_explore_forward(state, kp16)
    jax.block_until_ready((mu16, sg16))
    assert mu16.shape == (B, N_ACT) and sg16.shape == (B, N_ACT)
    assert jnp.allclose(mu16, mu_ref, atol=5e-2, rtol=2e-2)
    assert jnp.allclose(sg16, sigma_ref, atol=5e-2, rtol=2e-2)
    assert float(sg16.min()) >= sigma_floor and float(sg16.max()) <= 1.0

    # --- multi-tile grid + partial last batch tile (B not a multiple of TB) ---
    B_BIG = 300   # -> TB=144, grid=(3,), last tile has 12 valid rows
    state_big = jax.random.normal(k_big, (B_BIG, INPUT_DIM), jnp.float32)
    mu_big_ref, sg_big_ref = reference_forward(state_big, params)
    mu_big, sg_big = policy_explore_forward(state_big, kp16)
    jax.block_until_ready((mu_big, sg_big))
    assert mu_big.shape == (B_BIG, N_ACT) and sg_big.shape == (B_BIG, N_ACT)
    assert jnp.allclose(mu_big, mu_big_ref, atol=5e-2, rtol=2e-2)
    assert jnp.allclose(sg_big, sg_big_ref, atol=5e-2, rtol=2e-2)
    assert float(sg_big.min()) >= sigma_floor and float(sg_big.max()) <= 1.0

    # TODO(synk): sample_normal_explorer (Normal rsample + tanh-squashed log-prob)
    # needs in-kernel Gaussian sampling (pltpu.prng_*); only forward() is here.
    print("KERNEL_OK")
</pallas_src>

<mosaic_0001>
module attributes {stable_mosaic.version = 11 : i64} {
  func.func @_policy_kernel(%arg0: i32, %arg1: memref<8x32xf32, #tpu.memory_space<vmem>>, %arg2: memref<32x256xf32, #tpu.memory_space<vmem>>, %arg3: memref<1x256xf32, #tpu.memory_space<vmem>>, %arg4: memref<256x256xf32, #tpu.memory_space<vmem>>, %arg5: memref<1x256xf32, #tpu.memory_space<vmem>>, %arg6: memref<256x128xf32, #tpu.memory_space<vmem>>, %arg7: memref<1x128xf32, #tpu.memory_space<vmem>>, %arg8: memref<1x128xf32, #tpu.memory_space<vmem>>, %arg9: memref<1x128xf32, #tpu.memory_space<vmem>>, %arg10: memref<8x128xf32, #tpu.memory_space<vmem>>) attributes {dimension_semantics = [#tpu.dimension_semantics<parallel>], iteration_bounds = array<i64: 1>, scalar_prefetch = 0 : i64, scratch_operands = 0 : i64, tpu.core_type = #tpu.core_type<tc>, window_params = [{transform_indices = @transform_0, window_bounds = array<i64: 8, 32>}, {pipeline_mode = #tpu.pipeline_mode<synchronous>, transform_indices = @transform_1, window_bounds = array<i64: 32, 256>}, {pipeline_mode = #tpu.pipeline_mode<synchronous>, transform_indices = @transform_2, window_bounds = array<i64: 1, 256>}, {pipeline_mode = #tpu.pipeline_mode<synchronous>, transform_indices = @transform_3, window_bounds = array<i64: 256, 256>}, {pipeline_mode = #tpu.pipeline_mode<synchronous>, transform_indices = @transform_4, window_bounds = array<i64: 1, 256>}, {pipeline_mode = #tpu.pipeline_mode<synchronous>, transform_indices = @transform_5, window_bounds = array<i64: 256, 128>}, {pipeline_mode = #tpu.pipeline_mode<synchronous>, transform_indices = @transform_6, window_bounds = array<i64: 1, 128>}, {pipeline_mode = #tpu.pipeline_mode<synchronous>, transform_indices = @transform_7, window_bounds = array<i64: 1, 128>}, {pipeline_mode = #tpu.pipeline_mode<synchronous>, transform_indices = @transform_8, window_bounds = array<i64: 1, 128>}, {transform_indices = @transform_9, window_bounds = array<i64: 8, 128>}]} {
    %c0 = arith.constant 0 : index
    %c0_0 = arith.constant 0 : index
    %0 = vector.load %arg1[%c0, %c0_0] : memref<8x32xf32, #tpu.memory_space<vmem>>, vector<8x32xf32>
    %c0_1 = arith.constant 0 : index
    %c0_2 = arith.constant 0 : index
    %1 = vector.load %arg2[%c0_1, %c0_2] : memref<32x256xf32, #tpu.memory_space<vmem>>, vector<32x256xf32>
    %cst = arith.constant dense<0.000000e+00> : vector<8x256xf32>
    %2 = tpu.matmul %0, %1, %cst {dimension_numbers = #tpu.dot_dimension_numbers<[1], [0], [0], [1], [0, 0, 1, 1], [], []>} : vector<8x32xf32>, vector<32x256xf32>, vector<8x256xf32> -> vector<8x256xf32>
    %c0_3 = arith.constant 0 : index
    %c0_4 = arith.constant 0 : index
    %3 = vector.load %arg3[%c0_3, %c0_4] : memref<1x256xf32, #tpu.memory_space<vmem>>, vector<1x256xf32>
    %4 = vector.broadcast %3 : vector<1x256xf32> to vector<8x256xf32>
    %5 = arith.addf %2, %4 : vector<8x256xf32>
    %cst_5 = arith.constant 0.000000e+00 : f32
    %6 = vector.broadcast %cst_5 : f32 to vector<8x256xf32>
    %7 = arith.maximumf %5, %6 : vector<8x256xf32>
    %c0_6 = arith.constant 0 : index
    %c0_7 = arith.constant 0 : index
    %8 = vector.load %arg4[%c0_6, %c0_7] : memref<256x256xf32, #tpu.memory_space<vmem>>, vector<256x256xf32>
    %cst_8 = arith.constant dense<0.000000e+00> : vector<8x256xf32>
    %9 = tpu.matmul %7, %8, %cst_8 {dimension_numbers = #tpu.dot_dimension_numbers<[1], [0], [0], [1], [0, 0, 1, 1], [], []>} : vector<8x256xf32>, vector<256x256xf32>, vector<8x256xf32> -> vector<8x256xf32>
    %c0_9 = arith.constant 0 : index
    %c0_10 = arith.constant 0 : index
    %10 = vector.load %arg5[%c0_9, %c0_10] : memref<1x256xf32, #tpu.memory_space<vmem>>, vector<1x256xf32>
    %11 = vector.broadcast %10 : vector<1x256xf32> to vector<8x256xf32>
    %12 = arith.addf %9, %11 : vector<8x256xf32>
    %cst_11 = arith.constant 0.000000e+00 : f32
    %13 = vector.broadcast %cst_11 : f32 to vector<8x256xf32>
    %14 = arith.maximumf %12, %13 : vector<8x256xf32>
    %c0_12 = arith.constant 0 : index
    %c0_13 = arith.constant 0 : index
    %15 = vector.load %arg6[%c0_12, %c0_13] : memref<256x128xf32, #tpu.memory_space<vmem>>, vector<256x128xf32>
    %cst_14 = arith.constant dense<0.000000e+00> : vector<8x128xf32>
    %16 = tpu.matmul %14, %15, %cst_14 {dimension_numbers = #tpu.dot_dimension_numbers<[1], [0], [0], [1], [0, 0, 1, 1], [], []>} : vector<8x256xf32>, vector<256x128xf32>, vector<8x128xf32> -> vector<8x128xf32>
    %c0_15 = arith.constant 0 : index
    %c0_16 = arith.constant 0 : index
    %17 = vector.load %arg7[%c0_15, %c0_16] : memref<1x128xf32, #tpu.memory_space<vmem>>, vector<1x128xf32>
    %18 = vector.broadcast %17 : vector<1x128xf32> to vector<8x128xf32>
    %19 = arith.addf %16, %18 : vector<8x128xf32>
    %c0_17 = arith.constant 0 : index
    %c0_18 = arith.constant 0 : index
    %20 = vector.load %arg8[%c0_17, %c0_18] : memref<1x128xf32, #tpu.memory_space<vmem>>, vector<1x128xf32>
    %21 = vector.broadcast %20 : vector<1x128xf32> to vector<8x128xf32>
    %22 = arith.maximumf %19, %21 : vector<8x128xf32>
    %c0_19 = arith.constant 0 : index
    %c0_20 = arith.constant 0 : index
    %23 = vector.load %arg9[%c0_19, %c0_20] : memref<1x128xf32, #tpu.memory_space<vmem>>, vector<1x128xf32>
    %24 = vector.broadcast %23 : vector<1x128xf32> to vector<8x128xf32>
    %25 = arith.minimumf %22, %24 : vector<8x128xf32>
    %c0_21 = arith.constant 0 : index
    %c0_22 = arith.constant 0 : index
    %26 = vector.load %arg10[%c0_21, %c0_22] : memref<8x128xf32, #tpu.memory_space<vmem>>, vector<8x128xf32>
    tpu.vector_store %arg10[%c0_21, %c0_22], %25 {strides = array<i32>} : memref<8x128xf32, #tpu.memory_space<vmem>>, vector<8x128xf32>,
    return
  }
  func.func @transform_0(%arg0: i32) -> (i32, i32) {
    %c0_i32 = arith.constant 0 : i32
    %c0_i32_0 = arith.constant 0 : i32
    return %arg0, %c0_i32 : i32, i32
  }
  func.func @transform_1(%arg0: i32) -> (i32, i32) {
    %c0_i32 = arith.constant 0 : i32
    %c0_i32_0 = arith.constant 0 : i32
    %c0_i32_1 = arith.constant 0 : i32
    return %c0_i32, %c0_i32_0 : i32, i32
  }
  func.func @transform_2(%arg0: i32) -> (i32, i32) {
    %c0_i32 = arith.constant 0 : i32
    %c0_i32_0 = arith.constant 0 : i32
    %c0_i32_1 = arith.constant 0 : i32
    return %c0_i32, %c0_i32_0 : i32, i32
  }
  func.func @transform_3(%arg0: i32) -> (i32, i32) {
    %c0_i32 = arith.constant 0 : i32
    %c0_i32_0 = arith.constant 0 : i32
    %c0_i32_1 = arith.constant 0 : i32
    return %c0_i32, %c0_i32_0 : i32, i32
  }
  func.func @transform_4(%arg0: i32) -> (i32, i32) {
    %c0_i32 = arith.constant 0 : i32
    %c0_i32_0 = arith.constant 0 : i32
    %c0_i32_1 = arith.constant 0 : i32
    return %c0_i32, %c0_i32_0 : i32, i32
  }
  func.func @transform_5(%arg0: i32) -> (i32, i32) {
    %c0_i32 = arith.constant 0 : i32
    %c0_i32_0 = arith.constant 0 : i32
    %c0_i32_1 = arith.constant 0 : i32
    return %c0_i32, %c0_i32_0 : i32, i32
  }
  func.func @transform_6(%arg0: i32) -> (i32, i32) {
    %c0_i32 = arith.constant 0 : i32
    %c0_i32_0 = arith.constant 0 : i32
    %c0_i32_1 = arith.constant 0 : i32
    return %c0_i32, %c0_i32_0 : i32, i32
  }
  func.func @transform_7(%arg0: i32) -> (i32, i32) {
    %c0_i32 = arith.constant 0 : i32
    %c0_i32_0 = arith.constant 0 : i32
    %c0_i32_1 = arith.constant 0 : i32
    return %c0_i32, %c0_i32_0 : i32, i32
  }
  func.func @transform_8(%arg0: i32) -> (i32, i32) {
    %c0_i32 = arith.constant 0 : i32
    %c0_i32_0 = arith.constant 0 : i32
    %c0_i32_1 = arith.constant 0 : i32
    return %c0_i32, %c0_i32_0 : i32, i32
  }
  func.func @transform_9(%arg0: i32) -> (i32, i32) {
    %c0_i32 = arith.constant 0 : i32
    %c0_i32_0 = arith.constant 0 : i32
    return %arg0, %c0_i32 : i32, i32
  }
}

</mosaic_0001>

<bundles_post_ra>
// kernel: tpu_custom_call.1
= control target key start
LH: loop header
LB: loop body
LE: loop exit
PB: predicated region body
PF: predicated region fallthrough
CT: control target
= control target key end

     0   :  { %14 = vsyncpa [#allocation3], 0  ;;  %s683_s0 = inlined_call_operand.hbm [shape: f32[8,32], index: 0, kind: input, shape index: {}]   ;;  %s684_s1 = inlined_call_operand.hbm [shape: f32[32,256], index: 1, kind: input, shape index: {}]   ;;  %s685_s2 = inlined_call_operand.hbm [shape: f32[1,256], index: 2, kind: input, shape index: {}]   ;;  %s686_s3 = inlined_call_operand.hbm [shape: f32[256,256], index: 3, kind: input, shape index: {}]   ;;  %s687_s4 = inlined_call_operand.vmem [shape: f32[1,256], index: 4, kind: input, shape index: {}]   ;;  %s688_s5 = inlined_call_operand.hbm [shape: f32[256,128], index: 5, kind: input, shape index: {}]   ;;  %s689_s6 = inlined_call_operand.vmem [shape: f32[1,128], index: 6, kind: input, shape index: {}]   ;;  %s690_s7 = inlined_call_operand.vmem [shape: f32[1,128], index: 7, kind: input, shape index: {}]   ;;  %s691_s8 = inlined_call_operand.vmem [shape: f32[1,128], index: 8, kind: input, shape index: {}]   ;;  %s692_s9 = inlined_call_operand.hbm [shape: f32[8,128], index: 9, kind: output, shape index: {}]  }
   0x1   :  { %15 = vsyncpa [#allocation6], 0 }
   0x2   :  { %16 = vsyncpa [#allocation9], 0  ;;  %s33_s11 = sshll.u32 %s684_s1, 4  ;;  %s34_s11 = int_to_ptr.hbm [resolvable:$true] %s33_s11 }
   0x3   :  { %17 = vsyncpa [#allocation4], 0  ;;  %s593_s12 = smov [#allocation5]   ;;  %s57_s16 = sshll.u32 %s686_s3, 4  ;;  %s58_s16 = int_to_ptr.hbm [resolvable:$true] %s57_s16 }
   0x4   :  { %s35_s13 = sshll.u32 %s593_s12, 4  ;;  %s594_s17 = smov 256   ;;  %s36_s13 = int_to_ptr.vmem [resolvable:$true] %s35_s13 }
   0x5   :  { %s595_s18 = smov 16   ;;  %s596_s19 = smov [#allocation8]  }
   0x6   :  { %41 = dma.hbm_to_vmem [thread:$0]  %s34_s11, 1024, %s36_s13, [#allocation6], %s594_s17, %s594_s17, %s595_s18  }
   0x7   :  { %s59_s20 = sshll.u32 %s596_s19, 4  ;;  %s23_s23 = sshll.u32 %s683_s0, 4  ;;  %s60_s20 = int_to_ptr.vmem [resolvable:$true] %s59_s20  ;;  %s24_s23 = int_to_ptr.hbm [resolvable:$true] %s23_s23 }
   0x8   :  { %65 = dma.hbm_to_vmem [thread:$0]  %s58_s16, 8192, %s60_s20, [#allocation9], %s594_s17, %s594_s17, %s595_s18  }
   0x9   :  { %s47_s25 = sshll.u32 %s685_s2, 4  ;;  %s597_s26 = smov [#allocation2]   ;;  %s48_s25 = int_to_ptr.hbm [resolvable:$true] %s47_s25 }
   0xa   :  { %s25_s27 = sshll.u32 %s597_s26, 4  ;;  %s598_s3 = smov [#allocation7]   ;;  %s26_s27 = int_to_ptr.vmem [resolvable:$true] %s25_s27 }
   0xb   :  { %28 = dma.hbm_to_vmem [thread:$0]  %s24_s23, 128, %s26_s27, [#allocation3]  }
   0xc   :  { %s49_s28 = sshll.u32 %s598_s3, 4  ;;  %s72_s10 = sshll.u32 %s688_s5, 4  ;;  %s50_s28 = int_to_ptr.vmem [resolvable:$true] %s49_s28  ;;  %s73_s10 = int_to_ptr.hbm [resolvable:$true] %s72_s10 }
   0xd   :  { %52 = dma.hbm_to_vmem [thread:$0]  %s48_s25, 32, %s50_s28, [#allocation6]  }
   0xe   :  { %s599_s0 = smov [#allocation10]   ;;  %s600_s12 = smov 128  }
   0xf   :  { %s74_s11 = sshll.u32 %s599_s0, 4  ;;  %s601_s13 = smov 8   ;;  %s75_s11 = int_to_ptr.vmem [resolvable:$true] %s74_s11 }
  0x10   :  { %80 = dma.hbm_to_vmem [thread:$0]  %s73_s10, 4096, %s75_s11, [#allocation9], %s600_s12, %s600_s12, %s601_s13  }
  0x11   :  { %585 = dma.done.wait [#allocation3], 128  }
  0x12   :  { %586 = vsyncadd [#allocation3], 4294967168 }
  0x13   :  { %587 = dma.done.wait [#allocation6], 1056  }
  0x14   :  { %588 = vsyncadd [#allocation6], 4294966240 }
  0x15   :  { %589 = dma.done.wait [#allocation9], 12288  }
  0x16   :  { %590 = vsyncadd [#allocation9], 4294955008  ;;  %v114_v0 = vld [vmem:[#allocation5 + $0x30] sm:$0xff]  ;;  %v112_v1 = vld [vmem:[#allocation5 + $0x20] sm:$0xff]  ;;  %vm122_vm0 = vcmask 261120   ;;  %s602_s19 = smov [#allocation11]  }
  0x17   :  { %v115_v2 = vld [vmem:[#allocation5 + $0x38] sm:$0xff]  ;;  %138 = vmatpush.msra.mxu0 %v114_v0  ;;  %v113_v3 = vld [vmem:[#allocation5 + $0x28] sm:$0xff]  ;;  %v110_v4 = vld [vmem:[#allocation5 + $0x10] sm:$0xff]  ;;  %s412_s20 = sshll.u32 %s602_s19, 4  ;;  %s414_s23 = sshll.u32 %s692_s9, 4  ;;  %s413_s20 = int_to_ptr.vmem [resolvable:$true] %s412_s20  ;;  %s415_s23 = int_to_ptr.hbm [resolvable:$true] %s414_s23 }
  0x18   :  { %158 = vmatpush.msra.mxu1 %v115_v2  ;;  %v111_v5 = vld [vmem:[#allocation5 + $0x18] sm:$0xff]  ;;  %v196_v7 = vld [vmem:[#allocation8 + $0xe0] sm:$0xff]  ;;  %v197_v16 = vld [vmem:[#allocation8 + $0xe8] sm:$0xff] }
  0x19   :  { %139 = vmatpush.msra.mxu0 %v112_v1  ;;  %v198_v6 = vld [vmem:[#allocation8 + $0xf0] sm:$0xff]  ;;  %v108_v8 = vld [vmem:[#allocation5] sm:$0xff]  ;;  %v109_v9 = vld [vmem:[#allocation5 + $0x8] sm:$0xff] }
  0x1a   :  { %159 = vmatpush.msra.mxu1 %v113_v3  ;;  %238 = vmatpush.msra.mxu2 %v198_v6  ;;  %v230_v10 = vld [vmem:[#allocation8 + $0x1f0] sm:$0xff]  ;;  %v199_v12 = vld [vmem:[#allocation8 + $0xf8] sm:$0xff]  ;;  %v228_v15 = vld [vmem:[#allocation8 + $0x1e0] sm:$0xff] }
  0x1b   :  { %140 = vmatpush.msra.mxu0 %v110_v4  ;;  %v107_v11 = vld [vmem:[#allocation2] sm:$0xff]  ;;  %258 = vmatpush.msra.mxu3 %v230_v10  ;;  %v229_v17 = vld [vmem:[#allocation8 + $0x1e8] sm:$0xff]  ;;  %v192_v18 = vld [vmem:[#allocation8 + $0xc0] sm:$0xff] }
  0x1c   :  { %160 = vmatpush.msra.mxu1 %v111_v5  ;;  %239 = vmatpush.msra.mxu2 %v196_v7  ;;  %v231_v13 = vld [vmem:[#allocation8 + $0x1f8] sm:$0xff]  ;;  %v194_v14 = vld [vmem:[#allocation8 + $0xd0] sm:$0xff]  ;;  %v224_v23 = vld [vmem:[#allocation8 + $0x1c0] sm:$0xff] }
  0x1d   :  { %141 = vmatpush.msra.mxu0 %v108_v8  ;;  %v226_v19 = vld [vmem:[#allocation8 + $0x1d0] sm:$0xff]  ;;  %259 = vmatpush.msra.mxu3 %v228_v15  ;;  %v195_v20 = vld [vmem:[#allocation8 + $0xd8] sm:$0xff]  ;;  %v193_v24 = vld [vmem:[#allocation8 + $0xc8] sm:$0xff] }
  0x1e   :  { %161 = vmatpush.msra.mxu1 %v109_v9  ;;  %426 = vmatmul.msk.f32.vlgmr.msra.gmra.mxu0 %vm122_vm0, %v107_v11  ;;  %v227_v21 = vld [vmem:[#allocation8 + $0x1d8] sm:$0xff]  ;;  %v190_v22 = vld [vmem:[#allocation8 + $0xb0] sm:$0xff]  ;;  %v225_v25 = vld [vmem:[#allocation8 + $0x1c8] sm:$0xff] }
  0x1f   :  { %427 = vmatmul.msk.f32.vlgmr.msra.gmra.mxu1 %vm122_vm0, %v107_v11  ;;  %278 = vmatpush.msrb.mxu0 %v199_v12  ;;  %v188_v26 = vld [vmem:[#allocation8 + $0xa0] sm:$0xff]  ;;  %v222_v27 = vld [vmem:[#allocation8 + $0x1b0] sm:$0xff]  ;;  %v191_v28 = vld [vmem:[#allocation8 + $0xb8] sm:$0xff] }
  0x20   :  { %298 = vmatpush.msrb.mxu1 %v231_v13  ;;  %240 = vmatpush.msra.mxu2 %v194_v14  ;;  %v223_v29 = vld [vmem:[#allocation8 + $0x1b8] sm:$0xff]  ;;  %v186_v30 = vld [vmem:[#allocation8 + $0x90] sm:$0xff]  ;;  %v220_v31 = vld [vmem:[#allocation8 + $0x1a0] sm:$0xff] }
  0x21   :  { %279 = vmatpush.msrb.mxu0 %v197_v16  ;;  %260 = vmatpush.msra.mxu3 %v226_v19  ;;  %v189_v32 = vld [vmem:[#allocation8 + $0xa8] sm:$0xff]  ;;  %v184_v34 = vld [vmem:[#allocation8 + $0x80] sm:$0xff]  ;;  %v218_v35 = vld [vmem:[#allocation8 + $0x190] sm:$0xff] }
  0x22   :  { %299 = vmatpush.msrb.mxu1 %v229_v17  ;;  %241 = vmatpush.msra.mxu2 %v192_v18  ;;  %v221_v33 = vld [vmem:[#allocation8 + $0x1a8] sm:$0xff]  ;;  %v187_v36 = vld [vmem:[#allocation8 + $0x98] sm:$0xff]  ;;  %v182_v39 = vld [vmem:[#allocation8 + $0x70] sm:$0xff] }
  0x23   :  { %280 = vmatpush.msrb.mxu0 %v195_v20  ;;  %261 = vmatpush.msra.mxu3 %v224_v23  ;;  %v219_v37 = vld [vmem:[#allocation8 + $0x198] sm:$0xff]  ;;  %v185_v38 = vld [vmem:[#allocation8 + $0x88] sm:$0xff]  ;;  %v216_v40 = vld [vmem:[#allocation8 + $0x180] sm:$0xff] }
  0x24   :  { %300 = vmatpush.msrb.mxu1 %v227_v21  ;;  %242 = vmatpush.msra.mxu2 %v190_v22  ;;  %v217_v41 = vld [vmem:[#allocation8 + $0x188] sm:$0xff]  ;;  %v180_v42 = vld [vmem:[#allocation8 + $0x60] sm:$0xff]  ;;  %v214_v43 = vld [vmem:[#allocation8 + $0x170] sm:$0xff] }
  0x25   :  { %281 = vmatpush.msrb.mxu0 %v193_v24  ;;  %262 = vmatpush.msra.mxu3 %v222_v27  ;;  %v183_v44 = vld [vmem:[#allocation8 + $0x78] sm:$0xff]  ;;  %v178_v46 = vld [vmem:[#allocation8 + $0x50] sm:$0xff]  ;;  %v212_v47 = vld [vmem:[#allocation8 + $0x160] sm:$0xff] }
  0x26   :  { %301 = vmatpush.msrb.mxu1 %v225_v25  ;;  %243 = vmatpush.msra.mxu2 %v188_v26  ;;  %v215_v45 = vld [vmem:[#allocation8 + $0x178] sm:$0xff]  ;;  %v181_v48 = vld [vmem:[#allocation8 + $0x68] sm:$0xff]  ;;  %v176_v50 = vld [vmem:[#allocation8 + $0x40] sm:$0xff] }
  0x27   :  { %282 = vmatpush.msrb.mxu0 %v191_v28  ;;  %263 = vmatpush.msra.mxu3 %v220_v31  ;;  %v213_v49 = vld [vmem:[#allocation8 + $0x168] sm:$0xff]  ;;  %v210_v51 = vld [vmem:[#allocation8 + $0x150] sm:$0xff]  ;;  %v179_v52 = vld [vmem:[#allocation8 + $0x58] sm:$0xff] }
  0x28   :  { %302 = vmatpush.msrb.mxu1 %v223_v29  ;;  %244 = vmatpush.msra.mxu2 %v186_v30  ;;  %v211_v53 = vld [vmem:[#allocation8 + $0x158] sm:$0xff]  ;;  %v174_v54 = vld [vmem:[#allocation8 + $0x30] sm:$0xff]  ;;  %v208_v55 = vld [vmem:[#allocation8 + $0x140] sm:$0xff] }
  0x29   :  { %283 = vmatpush.msrb.mxu0 %v189_v32  ;;  %264 = vmatpush.msra.mxu3 %v218_v35  ;;  %v177_v56 = vld [vmem:[#allocation8 + $0x48] sm:$0xff]  ;;  %v175_v58 = vld [vmem:[#allocation8 + $0x38] sm:$0xff]  ;;  %v172_v59 = vld [vmem:[#allocation8 + $0x20] sm:$0xff] }
  0x2a   :  { %303 = vmatpush.msrb.mxu1 %v221_v33  ;;  %245 = vmatpush.msra.mxu2 %v184_v34  ;;  %v209_v57 = vld [vmem:[#allocation8 + $0x148] sm:$0xff]  ;;  %v206_v60 = vld [vmem:[#allocation8 + $0x130] sm:$0xff]  ;;  %v207_v62 = vld [vmem:[#allocation8 + $0x138] sm:$0xff] }
  0x2b   :  { %284 = vmatpush.msrb.mxu0 %v187_v36  ;;  %265 = vmatpush.msra.mxu3 %v216_v40  ;;  %v173_v61 = vld [vmem:[#allocation8 + $0x28] sm:$0xff]  ;;  %v170_v63 = vld [vmem:[#allocation8 + $0x10] sm:$0xff]  ;;  %v204_v0 = vld [vmem:[#allocation8 + $0x120] sm:$0xff] }
  0x2c   :  { %304 = vmatpush.msrb.mxu1 %v219_v37  ;;  %246 = vmatpush.msra.mxu2 %v182_v39  ;;  %v171_v1 = vld [vmem:[#allocation8 + $0x18] sm:$0xff]  ;;  %v205_v2 = vld [vmem:[#allocation8 + $0x128] sm:$0xff]  ;;  %v168_v3 = vld [vmem:[#allocation8] sm:$0xff] }
  0x2d   :  { %285 = vmatpush.msrb.mxu0 %v185_v38  ;;  %266 = vmatpush.msra.mxu3 %v214_v43  ;;  %v202_v4 = vld [vmem:[#allocation8 + $0x110] sm:$0xff]  ;;  %v169_v5 = vld [vmem:[#allocation8 + $0x8] sm:$0xff]  ;;  %v203_v6 = vld [vmem:[#allocation8 + $0x118] sm:$0xff] }
  0x2e   :  { %305 = vmatpush.msrb.mxu1 %v217_v41  ;;  %247 = vmatpush.msra.mxu2 %v180_v42  ;;  %v200_v7 = vld [vmem:[#allocation8 + $0x100] sm:$0xff]  ;;  %v201_v8 = vld [vmem:[#allocation8 + $0x108] sm:$0xff]  ;;  %v351_v9 = vld [vmem:[#allocation10 + $0xf8] sm:$0xff] }
  0x2f   :  { %286 = vmatpush.msrb.mxu0 %v183_v44  ;;  %267 = vmatpush.msra.mxu3 %v212_v47  ;;  %v350_v10 = vld [vmem:[#allocation10 + $0xf0] sm:$0xff]  ;;  %v335_v11 = vld [vmem:[#allocation10 + $0x78] sm:$0xff]  ;;  %v349_v13 = vld [vmem:[#allocation10 + $0xe8] sm:$0xff] }
  0x30   :  { %306 = vmatpush.msrb.mxu1 %v215_v45  ;;  %248 = vmatpush.msra.mxu2 %v178_v46  ;;  %v334_v12 = vld [vmem:[#allocation10 + $0x70] sm:$0xff]  ;;  %v333_v14 = vld [vmem:[#allocation10 + $0x68] sm:$0xff]  ;;  %v348_v15 = vld [vmem:[#allocation10 + $0xe0] sm:$0xff] }
  0x31   :  { %287 = vmatpush.msrb.mxu0 %v181_v48  ;;  %268 = vmatpush.msra.mxu3 %v210_v51  ;;  %v332_v16 = vld [vmem:[#allocation10 + $0x60] sm:$0xff]  ;;  %v347_v17 = vld [vmem:[#allocation10 + $0xd8] sm:$0xff]  ;;  %v346_v19 = vld [vmem:[#allocation10 + $0xd0] sm:$0xff] }
  0x32   :  { %307 = vmatpush.msrb.mxu1 %v213_v49  ;;  %249 = vmatpush.msra.mxu2 %v176_v50  ;;  %v331_v18 = vld [vmem:[#allocation10 + $0x58] sm:$0xff]  ;;  %v330_v20 = vld [vmem:[#allocation10 + $0x50] sm:$0xff]  ;;  %v345_v21 = vld [vmem:[#allocation10 + $0xc8] sm:$0xff] }
  0x33   :  { %288 = vmatpush.msrb.mxu0 %v179_v52  ;;  %269 = vmatpush.msra.mxu3 %v208_v55  ;;  %v329_v22 = vld [vmem:[#allocation10 + $0x48] sm:$0xff]  ;;  %v344_v23 = vld [vmem:[#allocation10 + $0xc0] sm:$0xff]  ;;  %v343_v25 = vld [vmem:[#allocation10 + $0xb8] sm:$0xff] }
  0x34   :  { %308 = vmatpush.msrb.mxu1 %v211_v53  ;;  %250 = vmatpush.msra.mxu2 %v174_v54  ;;  %v328_v24 = vld [vmem:[#allocation10 + $0x40] sm:$0xff]  ;;  %v327_v26 = vld [vmem:[#allocation10 + $0x38] sm:$0xff]  ;;  %v342_v27 = vld [vmem:[#allocation10 + $0xb0] sm:$0xff] }
  0x35   :  { %289 = vmatpush.msrb.mxu0 %v177_v56  ;;  %270 = vmatpush.msra.mxu3 %v206_v60  ;;  %v341_v28 = vld [vmem:[#allocation10 + $0xa8] sm:$0xff]  ;;  %v116_v29 = vld [vmem:[#allocation7] sm:$0x3]  ;;  %v340_v30 = vld [vmem:[#allocation10 + $0xa0] sm:$0xff] }
  0x36   :  { %309 = vmatpush.msrb.mxu1 %v209_v57  ;;  %251 = vmatpush.msra.mxu2 %v172_v59  ;;  %v118_v31 = vperm.slane %v116_v29, 0  ;;  %v119_v32 = vperm.slane %v116_v29, 1  ;;  %v326_v39 = vld [vmem:[#allocation10 + $0x30] sm:$0xff]  ;;  %v339_v40 = vld [vmem:[#allocation10 + $0x98] sm:$0xff]  ;;  %v325_v41 = vld [vmem:[#allocation10 + $0x28] sm:$0xff] }
  0x37   :  { %290 = vmatpush.msrb.mxu0 %v175_v58  ;;  %271 = vmatpush.msra.mxu3 %v204_v0  ;;  %v338_v42 = vld [vmem:[#allocation10 + $0x90] sm:$0xff]  ;;  %v324_v43 = vld [vmem:[#allocation10 + $0x20] sm:$0xff]  ;;  %v337_v44 = vld [vmem:[#allocation10 + $0x88] sm:$0xff] }
  0x38   :  { %310 = vmatpush.msrb.mxu1 %v207_v62  ;;  %252 = vmatpush.msra.mxu2 %v170_v63  ;;  %v323_v45 = vld [vmem:[#allocation10 + $0x18] sm:$0xff]  ;;  %v336_v46 = vld [vmem:[#allocation10 + $0x80] sm:$0xff]  ;;  %v322_v47 = vld [vmem:[#allocation10 + $0x10] sm:$0xff] }
  0x39   :  { %291 = vmatpush.msrb.mxu0 %v173_v61  ;;  %272 = vmatpush.msra.mxu3 %v202_v4  ;;  %v321_v48 = vld [vmem:[#allocation10 + $0x8] sm:$0xff]  ;;  %v320_v49 = vld [vmem:[#allocation10] sm:$0xff]  ;;  %v232_v50 = vld [vmem:[%s687_s4] sm:$0x3] }
  0x3a   :  { %311 = vmatpush.msrb.mxu1 %v205_v2  ;;  %253 = vmatpush.msra.mxu2 %v168_v3  ;;  %v235_v51 = vperm.slane %v232_v50, 1  ;;  %v234_v56 = vperm.slane %v232_v50, 0  ;;  %v438_v63 = vld [vmem:[%s689_s6] ss:$0 sm:$0xff] }
  0x3b   :  { %292 = vmatpush.msrb.mxu0 %v171_v1  ;;  %273 = vmatpush.msra.mxu3 %v200_v7  ;;  %v439_v2 = vld [vmem:[%s690_s7] ss:$0 sm:$0xff] }
  0x3c   :  { %312 = vmatpush.msrb.mxu1 %v203_v6  ;;  %356 = vmatpush.msrb.mxu2 %v335_v11 }
  0x3d   :  { %293 = vmatpush.msrb.mxu0 %v169_v5  ;;  %376 = vmatpush.msrb.mxu3 %v351_v9  ;;  %v440_v5 = vld [vmem:[%s691_s8] ss:$0 sm:$0xff] }
  0x3e   :  { %313 = vmatpush.msrb.mxu1 %v201_v8  ;;  %357 = vmatpush.msrb.mxu2 %v334_v12 }
  0x3f   :  { %377 = vmatpush.msrb.mxu3 %v350_v10 }
  0x40   :  { %358 = vmatpush.msrb.mxu2 %v333_v14 }
  0x41   :  { %378 = vmatpush.msrb.mxu3 %v349_v13 }
  0x42   :  { %359 = vmatpush.msrb.mxu2 %v332_v16 }
  0x43   :  { %379 = vmatpush.msrb.mxu3 %v348_v15 }
  0x44   :  { %360 = vmatpush.msrb.mxu2 %v331_v18 }
  0x45   :  { %380 = vmatpush.msrb.mxu3 %v347_v17 }
  0x46   :  { %361 = vmatpush.msrb.mxu2 %v330_v20 }
  0x47   :  { %381 = vmatpush.msrb.mxu3 %v346_v19 }
  0x48   :  { %362 = vmatpush.msrb.mxu2 %v329_v22 }
  0x49   :  { %382 = vmatpush.msrb.mxu3 %v345_v21 }
  0x4a   :  { %363 = vmatpush.msrb.mxu2 %v328_v24 }
  0x4b   :  { %383 = vmatpush.msrb.mxu3 %v344_v23 }
  0x4c   :  { %364 = vmatpush.msrb.mxu2 %v327_v26 }
  0x4d   :  { %384 = vmatpush.msrb.mxu3 %v343_v25 }
  0x4e   :  { %365 = vmatpush.msrb.mxu2 %v326_v39 }
  0x4f   :  { %385 = vmatpush.msrb.mxu3 %v342_v27 }
  0x50   :  { %366 = vmatpush.msrb.mxu2 %v325_v41 }
  0x51   :  { %386 = vmatpush.msrb.mxu3 %v341_v28 }
  0x52   :  { %367 = vmatpush.msrb.mxu2 %v324_v43 }
  0x53   :  { %387 = vmatpush.msrb.mxu3 %v340_v30 }
  0x54   :  { %368 = vmatpush.msrb.mxu2 %v323_v45 }
  0x55   :  { %388 = vmatpush.msrb.mxu3 %v339_v40 }
  0x56   :  { %369 = vmatpush.msrb.mxu2 %v322_v47 }
  0x57   :  { %389 = vmatpush.msrb.mxu3 %v338_v42 }
  0x58   :  { %370 = vmatpush.msrb.mxu2 %v321_v48 }
  0x59   :  { %390 = vmatpush.msrb.mxu3 %v337_v44 }
  0x5a   :  { %371 = vmatpush.msrb.mxu2 %v320_v49 }
  0x5b   :  { %391 = vmatpush.msrb.mxu3 %v336_v46 }
  0x9b   :  { %v143_v33 = vpop.f32.mrf.mxu0 }
  0x9c   :  { %v163_v34 = vpop.f32.mrf.mxu1  ;;  %v144_v35 = vadd.f32 %v143_v33, %v118_v31 }
  0x9d   :  { %v164_v36 = vadd.f32 %v163_v34, %v119_v32 }
  0x9e   :  { %v166_v37 = vmax.f32 %v144_v35, 0.0 }
  0x9f   :  { %v167_v38 = vmax.f32 %v164_v36, 0.0 }
  0xa0   :  { %254 = vmatmul.f32.vlgmr.msra.gmra.mxu2 %v166_v37  ;;  %294 = vmatmul.f32.vlgmr.msrb.gmra.mxu0 %v166_v37 }
  0xa1   :  { %274 = vmatmul.f32.vlgmr.msra.gmra.mxu3 %v167_v38  ;;  %314 = vmatmul.f32.vlgmr.msrb.gmra.mxu1 %v167_v38 }
 0x11d   :  { %v295_v52 = vpop.f32.mrf.mxu0 }
 0x11e   :  { %v296_v53 = vadd.f32 %v295_v52, %v235_v51  ;;  %v315_v54 = vpop.f32.mrf.mxu1 }
 0x120   :  { %v316_v55 = vadd.f32 %v315_v54, %v296_v53 }
 0x122   :  { %v319_v57 = vmax.f32 %v316_v55, 0.0 }
 0x123   :  { %v255_v58 = vpop.f32.mrf.mxu2 }
 0x124   :  { %v256_v59 = vadd.f32 %v255_v58, %v234_v56  ;;  %392 = vmatmul.f32.vlgmr.msrb.gmra.mxu3 %v319_v57  ;;  %v275_v60 = vpop.f32.mrf.mxu3 }
 0x126   :  { %v276_v61 = vadd.f32 %v275_v60, %v256_v59 }
 0x128   :  { %v318_v62 = vmax.f32 %v276_v61, 0.0 }
 0x12a   :  { %372 = vmatmul.f32.vlgmr.msrb.gmra.mxu2 %v318_v62 }
 0x1a7   :  { %v393_v3 = vpop.f32.mrf.mxu3 }
 0x1ad   :  { %v373_v0 = vpop.f32.mrf.mxu2 }
 0x1ae   :  { %v374_v1 = vadd.f32 %v438_v63, %v373_v0 }
 0x1b0   :  { %v394_v4 = vadd.f32 %v393_v3, %v374_v1 }
 0x1b2   :  { %v400_v6 = vmax.f32 %v394_v4, %v439_v2 }
 0x1b4   :  { %v405_v7 = vmin.f32 %v400_v6, %v440_v5 }
 0x1b6   :  { %406 = vst [vmem:[#allocation11] sm:$0xff] %v405_v7 }
 0x1b7   :  { %417 = dma.vmem_to_hbm [thread:$0]  %s413_s20, 128, %s415_s23, [#allocation4]  }
 0x1b8   :  { %591 = dma.done.wait [#allocation4], 128  }
 0x1b9   :  { %592 = vsyncadd [#allocation4], 4294967168 }
 0x1ba   :  { %422 = vsyncpa [#allocation3], 1 }
 0x1bb   :  { %423 = vsyncpa [#allocation6], 1 }
 0x1bc   :  { %424 = vsyncpa [#allocation9], 1 }
 0x1bd   :  { %425 = vsyncpa [#allocation4], 1 }

</bundles_post_ra>
